<compile_context>
chip_gen: v7x
topology: tpu7x:2x2x1
jax: 0.10.0
libtpu: 0.0.40
codegen_flags: <defaults>
</compile_context>

<pallas_src>
import functools

import jax
import jax.numpy as jnp
from jax.experimental import pallas as pl
from jax.experimental.pallas import tpu as pltpu


def _lstm_decoder_kernel(x_ref, wih_ref, whh_ref, b_ref, wlin_ref, blin_ref,
                         out_ref, hs_ref, *, seq_len, batch, hidden_dim):
    """Single-invocation LSTM decoder: batched projections + unrolled recurrence."""
    T, B, H = seq_len, batch, hidden_dim

    # ---- Prologue: one batched input projection for all T timesteps at once.
    # (T*B, 2H) @ (2H, 4H) -> (T*B, 4H); combined bias b_ih + b_hh folded in.
    gates_x = (jnp.dot(x_ref[...], wih_ref[...],
                       preferred_element_type=jnp.float32)
               + b_ref[...])                                   # (T*B, 4H)

    whh = whh_ref[...]                                         # (H, 4H), stays resident

    # ---- Serial recurrence: only h @ W_hh^T + gate math per step.
    # T is small and static -> fully unrolled with static (sublane-aligned) slices.
    h = jnp.zeros((B, H), jnp.float32)
    c = jnp.zeros((B, H), jnp.float32)
    for t in range(T):
        gates = gates_x[t * B:(t + 1) * B, :] + jnp.dot(
            h, whh, preferred_element_type=jnp.float32)        # (B, 4H)
        # NOTE: lane slices at H-multiples inside the 4H=128-lane gates vector
        # cost a few lane-selects per step; acceptable at this size.
        i_g = jax.nn.sigmoid(gates[:, 0 * H:1 * H])
        f_g = jax.nn.sigmoid(gates[:, 1 * H:2 * H])
        g_g = jnp.tanh(gates[:, 2 * H:3 * H])
        o_g = jax.nn.sigmoid(gates[:, 3 * H:4 * H])
        c = f_g * c + i_g * g_g
        h = o_g * jnp.tanh(c)
        hs_ref[t * B:(t + 1) * B, :] = h                       # stage h_t for epilogue

    # ---- Epilogue: one batched output Linear + a single store of the whole block.
    out_ref[...] = (jnp.dot(hs_ref[...], wlin_ref[...],
                            preferred_element_type=jnp.float32)
                    + blin_ref[...])                           # (T*B, O)


def lstm_time_decoder(C, t, mask, params, max_seq_len):
    """Pallas-backed equivalent of LSTMTimeDecoder.forward (mask is unused, as in PyTorch)."""
    del mask  # unused in the reference module
    B, H = C.shape
    O = params["lin_w"].shape[0]
    T = max_seq_len

    # --- glue (plain JAX): time-delta encoding and LSTM input construction ---
    t_delta = t[1:] - t[:-1]
    t_delta_mat = jnp.concatenate([jnp.zeros_like(t_delta[0:1]), t_delta], axis=0)
    time_encoded = (t_delta_mat[:, :, 0:1] @ params["time_w"].T
                    + params["time_b"])                         # (T_in, B, H)
    C_b = jnp.broadcast_to(C[None, :, :], (T, B, H))
    x_seq = jnp.concatenate([C_b, time_encoded[:T]], axis=-1)   # (T, B, 2H)
    x_flat = x_seq.astype(jnp.float32).reshape(T * B, 2 * H)    # (T*B, 2H)

    wih_t = params["w_ih"].T.astype(jnp.float32)                # (2H, 4H)
    whh_t = params["w_hh"].T.astype(jnp.float32)                # (H, 4H)
    b = (params["b_ih"] + params["b_hh"]).reshape(1, 4 * H).astype(jnp.float32)
    wlin_t = params["lin_w"].T.astype(jnp.float32)              # (H, O)
    blin = params["lin_b"].reshape(1, O).astype(jnp.float32)

    kernel = functools.partial(_lstm_decoder_kernel,
                               seq_len=T, batch=B, hidden_dim=H)

    out_flat = pl.pallas_call(
        kernel,
        out_shape=jax.ShapeDtypeStruct((T * B, O), jnp.float32),
        grid_spec=pltpu.PrefetchScalarGridSpec(
            num_scalar_prefetch=0,
            grid=(1,),                                          # single invocation
            in_specs=[
                pl.BlockSpec((T * B, 2 * H), lambda i: (0, 0)),  # all timestep inputs
                pl.BlockSpec((2 * H, 4 * H), lambda i: (0, 0)),  # W_ih^T (resident)
                pl.BlockSpec((H, 4 * H), lambda i: (0, 0)),      # W_hh^T (resident)
                pl.BlockSpec((1, 4 * H), lambda i: (0, 0)),      # combined gate bias
                pl.BlockSpec((H, O), lambda i: (0, 0)),          # lin W^T
                pl.BlockSpec((1, O), lambda i: (0, 0)),          # lin bias
            ],
            out_specs=pl.BlockSpec((T * B, O), lambda i: (0, 0)),
            scratch_shapes=[
                pltpu.VMEM((T * B, H), jnp.float32),             # staged h_t for all steps
            ],
        ),
        compiler_params=pltpu.CompilerParams(
            dimension_semantics=("arbitrary",)),                 # recurrent / serial
    )(x_flat, wih_t, whh_t, b, wlin_t, blin)

    return out_flat.reshape(T, B, O)


def _reference(C, t, params, max_seq_len):
    """Pure-JAX reference mirroring the PyTorch forward (for self-check)."""
    B, H = C.shape
    t_delta = t[1:] - t[:-1]
    t_delta_mat = jnp.concatenate([jnp.zeros_like(t_delta[0:1]), t_delta], axis=0)
    time_encoded = t_delta_mat[:, :, 0:1] @ params["time_w"].T + params["time_b"]

    def step(carry, te):
        h, c = carry
        x = jnp.concatenate([C, te], axis=-1)
        gates = (x @ params["w_ih"].T + params["b_ih"]
                 + h @ params["w_hh"].T + params["b_hh"])
        i = jax.nn.sigmoid(gates[:, 0 * H:1 * H])
        f = jax.nn.sigmoid(gates[:, 1 * H:2 * H])
        g = jnp.tanh(gates[:, 2 * H:3 * H])
        o = jax.nn.sigmoid(gates[:, 3 * H:4 * H])
        c = f * c + i * g
        h = o * jnp.tanh(c)
        out = h @ params["lin_w"].T + params["lin_b"]
        return (h, c), out

    init = (jnp.zeros((B, H), jnp.float32), jnp.zeros((B, H), jnp.float32))
    _, outs = jax.lax.scan(step, init, time_encoded[:max_seq_len])
    return outs


if __name__ == "__main__":
    H, O, T, B = 32, 8, 8, 8      # hidden_dim, output_dim, max_seq_len, batch

    key = jax.random.PRNGKey(0)
    ks = jax.random.split(key, 10)
    s = 1.0 / (H ** 0.5)          # PyTorch-style uniform(-1/sqrt(H), 1/sqrt(H)) init
    params = {
        "w_ih":   jax.random.uniform(ks[0], (4 * H, 2 * H), jnp.float32, -s, s),
        "w_hh":   jax.random.uniform(ks[1], (4 * H, H),     jnp.float32, -s, s),
        "b_ih":   jax.random.uniform(ks[2], (4 * H,),       jnp.float32, -s, s),
        "b_hh":   jax.random.uniform(ks[3], (4 * H,),       jnp.float32, -s, s),
        "lin_w":  jax.random.uniform(ks[4], (O, H),         jnp.float32, -s, s),
        "lin_b":  jax.random.uniform(ks[5], (O,),           jnp.float32, -s, s),
        "time_w": jax.random.uniform(ks[6], (H, 1),         jnp.float32, -1.0, 1.0),
        "time_b": jax.random.uniform(ks[7], (H,),           jnp.float32, -1.0, 1.0),
    }

    C = jax.random.normal(ks[8], (B, H), jnp.float32)
    # monotone timestamps so t_delta is meaningful
    t = jnp.cumsum(jax.random.uniform(ks[9], (T, B, 1), jnp.float32, 0.1, 1.0), axis=0)
    mask = jnp.ones((T, B, 1), jnp.float32)   # unused by the forward, kept for signature parity

    out = lstm_time_decoder(C, t, mask, params, T)
    out = jax.block_until_ready(out)

    ref = _reference(C, t, params, T)
    assert out.shape == (T, B, O)
    assert jnp.allclose(out, ref, rtol=1e-2, atol=1e-2)

    print("KERNEL_OK")
</pallas_src>

<mosaic_0001>
module attributes {stable_mosaic.version = 11 : i64} {
  func.func @_lstm_decoder_kernel(%arg0: i32, %arg1: memref<64x64xf32, #tpu.memory_space<vmem>>, %arg2: memref<64x128xf32, #tpu.memory_space<vmem>>, %arg3: memref<32x128xf32, #tpu.memory_space<vmem>>, %arg4: memref<1x128xf32, #tpu.memory_space<vmem>>, %arg5: memref<32x8xf32, #tpu.memory_space<vmem>>, %arg6: memref<1x8xf32, #tpu.memory_space<vmem>>, %arg7: memref<64x8xf32, #tpu.memory_space<vmem>>, %arg8: memref<64x32xf32, #tpu.memory_space<vmem>>) attributes {dimension_semantics = [#tpu.dimension_semantics<arbitrary>], iteration_bounds = array<i64: 1>, scalar_prefetch = 0 : i64, scratch_operands = 1 : i64, tpu.core_type = #tpu.core_type<tc>, window_params = [{pipeline_mode = #tpu.pipeline_mode<synchronous>, transform_indices = @transform_0, window_bounds = array<i64: 64, 64>}, {pipeline_mode = #tpu.pipeline_mode<synchronous>, transform_indices = @transform_1, window_bounds = array<i64: 64, 128>}, {pipeline_mode = #tpu.pipeline_mode<synchronous>, transform_indices = @transform_2, window_bounds = array<i64: 32, 128>}, {pipeline_mode = #tpu.pipeline_mode<synchronous>, transform_indices = @transform_3, window_bounds = array<i64: 1, 128>}, {pipeline_mode = #tpu.pipeline_mode<synchronous>, transform_indices = @transform_4, window_bounds = array<i64: 32, 8>}, {pipeline_mode = #tpu.pipeline_mode<synchronous>, transform_indices = @transform_5, window_bounds = array<i64: 1, 8>}, {pipeline_mode = #tpu.pipeline_mode<synchronous>, transform_indices = @transform_6, window_bounds = array<i64: 64, 8>}]} {
    %c0 = arith.constant 0 : index
    %c0_0 = arith.constant 0 : index
    %0 = vector.load %arg1[%c0, %c0_0] : memref<64x64xf32, #tpu.memory_space<vmem>>, vector<64x64xf32>
    %c0_1 = arith.constant 0 : index
    %c0_2 = arith.constant 0 : index
    %1 = vector.load %arg2[%c0_1, %c0_2] : memref<64x128xf32, #tpu.memory_space<vmem>>, vector<64x128xf32>
    %cst = arith.constant dense<0.000000e+00> : vector<64x128xf32>
    %2 = tpu.matmul %0, %1, %cst {dimension_numbers = #tpu.dot_dimension_numbers<[1], [0], [0], [1], [0, 0, 1, 1], [], []>} : vector<64x64xf32>, vector<64x128xf32>, vector<64x128xf32> -> vector<64x128xf32>
    %c0_3 = arith.constant 0 : index
    %c0_4 = arith.constant 0 : index
    %3 = vector.load %arg4[%c0_3, %c0_4] : memref<1x128xf32, #tpu.memory_space<vmem>>, vector<1x128xf32>
    %4 = vector.broadcast %3 : vector<1x128xf32> to vector<64x128xf32>
    %5 = arith.addf %2, %4 : vector<64x128xf32>
    %c0_5 = arith.constant 0 : index
    %c0_6 = arith.constant 0 : index
    %6 = vector.load %arg3[%c0_5, %c0_6] : memref<32x128xf32, #tpu.memory_space<vmem>>, vector<32x128xf32>
    %cst_7 = arith.constant 0.000000e+00 : f32
    %7 = vector.broadcast %cst_7 : f32 to vector<8x32xf32>
    %cst_8 = arith.constant 0.000000e+00 : f32
    %8 = vector.broadcast %cst_8 : f32 to vector<8x32xf32>
    %9 = vector.extract_strided_slice %5 {offsets = [0, 0], sizes = [8, 128], strides = [1, 1]} : vector<64x128xf32> to vector<8x128xf32>
    %cst_9 = arith.constant dense<0.000000e+00> : vector<8x128xf32>
    %10 = tpu.matmul %7, %6, %cst_9 {dimension_numbers = #tpu.dot_dimension_numbers<[1], [0], [0], [1], [0, 0, 1, 1], [], []>} : vector<8x32xf32>, vector<32x128xf32>, vector<8x128xf32> -> vector<8x128xf32>
    %11 = arith.addf %9, %10 : vector<8x128xf32>
    %12 = vector.extract_strided_slice %11 {offsets = [0, 0], sizes = [8, 32], strides = [1, 1]} : vector<8x128xf32> to vector<8x32xf32>
    %13 = arith.negf %12 : vector<8x32xf32>
    %14 = math.exp %13 : vector<8x32xf32>
    %cst_10 = arith.constant 1.000000e+00 : f32
    %15 = vector.broadcast %cst_10 : f32 to vector<8x32xf32>
    %16 = arith.addf %15, %14 : vector<8x32xf32>
    %17 = arith.divf %15, %16 : vector<8x32xf32>
    %18 = vector.extract_strided_slice %11 {offsets = [0, 32], sizes = [8, 32], strides = [1, 1]} : vector<8x128xf32> to vector<8x32xf32>
    %19 = arith.negf %18 : vector<8x32xf32>
    %20 = math.exp %19 : vector<8x32xf32>
    %cst_11 = arith.constant 1.000000e+00 : f32
    %21 = vector.broadcast %cst_11 : f32 to vector<8x32xf32>
    %22 = arith.addf %21, %20 : vector<8x32xf32>
    %23 = arith.divf %21, %22 : vector<8x32xf32>
    %24 = vector.extract_strided_slice %11 {offsets = [0, 64], sizes = [8, 32], strides = [1, 1]} : vector<8x128xf32> to vector<8x32xf32>
    %25 = math.tanh %24 : vector<8x32xf32>
    %26 = vector.extract_strided_slice %11 {offsets = [0, 96], sizes = [8, 32], strides = [1, 1]} : vector<8x128xf32> to vector<8x32xf32>
    %27 = arith.negf %26 : vector<8x32xf32>
    %28 = math.exp %27 : vector<8x32xf32>
    %cst_12 = arith.constant 1.000000e+00 : f32
    %29 = vector.broadcast %cst_12 : f32 to vector<8x32xf32>
    %30 = arith.addf %29, %28 : vector<8x32xf32>
    %31 = arith.divf %29, %30 : vector<8x32xf32>
    %32 = arith.mulf %23, %8 : vector<8x32xf32>
    %33 = arith.mulf %17, %25 : vector<8x32xf32>
    %34 = arith.addf %32, %33 : vector<8x32xf32>
    %35 = math.tanh %34 : vector<8x32xf32>
    %36 = arith.mulf %31, %35 : vector<8x32xf32>
    %c0_13 = arith.constant 0 : index
    %c0_14 = arith.constant 0 : index
    %37 = vector.load %arg8[%c0_13, %c0_14] : memref<64x32xf32, #tpu.memory_space<vmem>>, vector<8x32xf32>
    tpu.vector_store %arg8[%c0_13, %c0_14], %36 {strides = array<i32>} : memref<64x32xf32, #tpu.memory_space<vmem>>, vector<8x32xf32>,
    %38 = vector.extract_strided_slice %5 {offsets = [8, 0], sizes = [8, 128], strides = [1, 1]} : vector<64x128xf32> to vector<8x128xf32>
    %cst_15 = arith.constant dense<0.000000e+00> : vector<8x128xf32>
    %39 = tpu.matmul %36, %6, %cst_15 {dimension_numbers = #tpu.dot_dimension_numbers<[1], [0], [0], [1], [0, 0, 1, 1], [], []>} : vector<8x32xf32>, vector<32x128xf32>, vector<8x128xf32> -> vector<8x128xf32>
    %40 = arith.addf %38, %39 : vector<8x128xf32>
    %41 = vector.extract_strided_slice %40 {offsets = [0, 0], sizes = [8, 32], strides = [1, 1]} : vector<8x128xf32> to vector<8x32xf32>
    %42 = arith.negf %41 : vector<8x32xf32>
    %43 = math.exp %42 : vector<8x32xf32>
    %cst_16 = arith.constant 1.000000e+00 : f32
    %44 = vector.broadcast %cst_16 : f32 to vector<8x32xf32>
    %45 = arith.addf %44, %43 : vector<8x32xf32>
    %46 = arith.divf %44, %45 : vector<8x32xf32>
    %47 = vector.extract_strided_slice %40 {offsets = [0, 32], sizes = [8, 32], strides = [1, 1]} : vector<8x128xf32> to vector<8x32xf32>
    %48 = arith.negf %47 : vector<8x32xf32>
    %49 = math.exp %48 : vector<8x32xf32>
    %cst_17 = arith.constant 1.000000e+00 : f32
    %50 = vector.broadcast %cst_17 : f32 to vector<8x32xf32>
    %51 = arith.addf %50, %49 : vector<8x32xf32>
    %52 = arith.divf %50, %51 : vector<8x32xf32>
    %53 = vector.extract_strided_slice %40 {offsets = [0, 64], sizes = [8, 32], strides = [1, 1]} : vector<8x128xf32> to vector<8x32xf32>
    %54 = math.tanh %53 : vector<8x32xf32>
    %55 = vector.extract_strided_slice %40 {offsets = [0, 96], sizes = [8, 32], strides = [1, 1]} : vector<8x128xf32> to vector<8x32xf32>
    %56 = arith.negf %55 : vector<8x32xf32>
    %57 = math.exp %56 : vector<8x32xf32>
    %cst_18 = arith.constant 1.000000e+00 : f32
    %58 = vector.broadcast %cst_18 : f32 to vector<8x32xf32>
    %59 = arith.addf %58, %57 : vector<8x32xf32>
    %60 = arith.divf %58, %59 : vector<8x32xf32>
    %61 = arith.mulf %52, %34 : vector<8x32xf32>
    %62 = arith.mulf %46, %54 : vector<8x32xf32>
    %63 = arith.addf %61, %62 : vector<8x32xf32>
    %64 = math.tanh %63 : vector<8x32xf32>
    %65 = arith.mulf %60, %64 : vector<8x32xf32>
    %c8 = arith.constant 8 : index
    %c0_19 = arith.constant 0 : index
    %66 = vector.load %arg8[%c8, %c0_19] : memref<64x32xf32, #tpu.memory_space<vmem>>, vector<8x32xf32>
    tpu.vector_store %arg8[%c8, %c0_19], %65 {strides = array<i32>} : memref<64x32xf32, #tpu.memory_space<vmem>>, vector<8x32xf32>,
    %67 = vector.extract_strided_slice %5 {offsets = [16, 0], sizes = [8, 128], strides = [1, 1]} : vector<64x128xf32> to vector<8x128xf32>
    %cst_20 = arith.constant dense<0.000000e+00> : vector<8x128xf32>
    %68 = tpu.matmul %65, %6, %cst_20 {dimension_numbers = #tpu.dot_dimension_numbers<[1], [0], [0], [1], [0, 0, 1, 1], [], []>} : vector<8x32xf32>, vector<32x128xf32>, vector<8x128xf32> -> vector<8x128xf32>
    %69 = arith.addf %67, %68 : vector<8x128xf32>
    %70 = vector.extract_strided_slice %69 {offsets = [0, 0], sizes = [8, 32], strides = [1, 1]} : vector<8x128xf32> to vector<8x32xf32>
    %71 = arith.negf %70 : vector<8x32xf32>
    %72 = math.exp %71 : vector<8x32xf32>
    %cst_21 = arith.constant 1.000000e+00 : f32
    %73 = vector.broadcast %cst_21 : f32 to vector<8x32xf32>
    %74 = arith.addf %73, %72 : vector<8x32xf32>
    %75 = arith.divf %73, %74 : vector<8x32xf32>
    %76 = vector.extract_strided_slice %69 {offsets = [0, 32], sizes = [8, 32], strides = [1, 1]} : vector<8x128xf32> to vector<8x32xf32>
    %77 = arith.negf %76 : vector<8x32xf32>
    %78 = math.exp %77 : vector<8x32xf32>
    %cst_22 = arith.constant 1.000000e+00 : f32
    %79 = vector.broadcast %cst_22 : f32 to vector<8x32xf32>
    %80 = arith.addf %79, %78 : vector<8x32xf32>
    %81 = arith.divf %79, %80 : vector<8x32xf32>
    %82 = vector.extract_strided_slice %69 {offsets = [0, 64], sizes = [8, 32], strides = [1, 1]} : vector<8x128xf32> to vector<8x32xf32>
    %83 = math.tanh %82 : vector<8x32xf32>
    %84 = vector.extract_strided_slice %69 {offsets = [0, 96], sizes = [8, 32], strides = [1, 1]} : vector<8x128xf32> to vector<8x32xf32>
    %85 = arith.negf %84 : vector<8x32xf32>
    %86 = math.exp %85 : vector<8x32xf32>
    %cst_23 = arith.constant 1.000000e+00 : f32
    %87 = vector.broadcast %cst_23 : f32 to vector<8x32xf32>
    %88 = arith.addf %87, %86 : vector<8x32xf32>
    %89 = arith.divf %87, %88 : vector<8x32xf32>
    %90 = arith.mulf %81, %63 : vector<8x32xf32>
    %91 = arith.mulf %75, %83 : vector<8x32xf32>
    %92 = arith.addf %90, %91 : vector<8x32xf32>
    %93 = math.tanh %92 : vector<8x32xf32>
    %94 = arith.mulf %89, %93 : vector<8x32xf32>
    %c16 = arith.constant 16 : index
    %c0_24 = arith.constant 0 : index
    %95 = vector.load %arg8[%c16, %c0_24] : memref<64x32xf32, #tpu.memory_space<vmem>>, vector<8x32xf32>
    tpu.vector_store %arg8[%c16, %c0_24], %94 {strides = array<i32>} : memref<64x32xf32, #tpu.memory_space<vmem>>, vector<8x32xf32>,
    %96 = vector.extract_strided_slice %5 {offsets = [24, 0], sizes = [8, 128], strides = [1, 1]} : vector<64x128xf32> to vector<8x128xf32>
    %cst_25 = arith.constant dense<0.000000e+00> : vector<8x128xf32>
    %97 = tpu.matmul %94, %6, %cst_25 {dimension_numbers = #tpu.dot_dimension_numbers<[1], [0], [0], [1], [0, 0, 1, 1], [], []>} : vector<8x32xf32>, vector<32x128xf32>, vector<8x128xf32> -> vector<8x128xf32>
    %98 = arith.addf %96, %97 : vector<8x128xf32>
    %99 = vector.extract_strided_slice %98 {offsets = [0, 0], sizes = [8, 32], strides = [1, 1]} : vector<8x128xf32> to vector<8x32xf32>
    %100 = arith.negf %99 : vector<8x32xf32>
    %101 = math.exp %100 : vector<8x32xf32>
    %cst_26 = arith.constant 1.000000e+00 : f32
    %102 = vector.broadcast %cst_26 : f32 to vector<8x32xf32>
    %103 = arith.addf %102, %101 : vector<8x32xf32>
    %104 = arith.divf %102, %103 : vector<8x32xf32>
    %105 = vector.extract_strided_slice %98 {offsets = [0, 32], sizes = [8, 32], strides = [1, 1]} : vector<8x128xf32> to vector<8x32xf32>
    %106 = arith.negf %105 : vector<8x32xf32>
    %107 = math.exp %106 : vector<8x32xf32>
    %cst_27 = arith.constant 1.000000e+00 : f32
    %108 = vector.broadcast %cst_27 : f32 to vector<8x32xf32>
    %109 = arith.addf %108, %107 : vector<8x32xf32>
    %110 = arith.divf %108, %109 : vector<8x32xf32>
    %111 = vector.extract_strided_slice %98 {offsets = [0, 64], sizes = [8, 32], strides = [1, 1]} : vector<8x128xf32> to vector<8x32xf32>
    %112 = math.tanh %111 : vector<8x32xf32>
    %113 = vector.extract_strided_slice %98 {offsets = [0, 96], sizes = [8, 32], strides = [1, 1]} : vector<8x128xf32> to vector<8x32xf32>
    %114 = arith.negf %113 : vector<8x32xf32>
    %115 = math.exp %114 : vector<8x32xf32>
    %cst_28 = arith.constant 1.000000e+00 : f32
    %116 = vector.broadcast %cst_28 : f32 to vector<8x32xf32>
    %117 = arith.addf %116, %115 : vector<8x32xf32>
    %118 = arith.divf %116, %117 : vector<8x32xf32>
    %119 = arith.mulf %110, %92 : vector<8x32xf32>
    %120 = arith.mulf %104, %112 : vector<8x32xf32>
    %121 = arith.addf %119, %120 : vector<8x32xf32>
    %122 = math.tanh %121 : vector<8x32xf32>
    %123 = arith.mulf %118, %122 : vector<8x32xf32>
    %c24 = arith.constant 24 : index
    %c0_29 = arith.constant 0 : index
    %124 = vector.load %arg8[%c24, %c0_29] : memref<64x32xf32, #tpu.memory_space<vmem>>, vector<8x32xf32>
    tpu.vector_store %arg8[%c24, %c0_29], %123 {strides = array<i32>} : memref<64x32xf32, #tpu.memory_space<vmem>>, vector<8x32xf32>,
    %125 = vector.extract_strided_slice %5 {offsets = [32, 0], sizes = [8, 128], strides = [1, 1]} : vector<64x128xf32> to vector<8x128xf32>
    %cst_30 = arith.constant dense<0.000000e+00> : vector<8x128xf32>
    %126 = tpu.matmul %123, %6, %cst_30 {dimension_numbers = #tpu.dot_dimension_numbers<[1], [0], [0], [1], [0, 0, 1, 1], [], []>} : vector<8x32xf32>, vector<32x128xf32>, vector<8x128xf32> -> vector<8x128xf32>
    %127 = arith.addf %125, %126 : vector<8x128xf32>
    %128 = vector.extract_strided_slice %127 {offsets = [0, 0], sizes = [8, 32], strides = [1, 1]} : vector<8x128xf32> to vector<8x32xf32>
    %129 = arith.negf %128 : vector<8x32xf32>
    %130 = math.exp %129 : vector<8x32xf32>
    %cst_31 = arith.constant 1.000000e+00 : f32
    %131 = vector.broadcast %cst_31 : f32 to vector<8x32xf32>
    %132 = arith.addf %131, %130 : vector<8x32xf32>
    %133 = arith.divf %131, %132 : vector<8x32xf32>
    %134 = vector.extract_strided_slice %127 {offsets = [0, 32], sizes = [8, 32], strides = [1, 1]} : vector<8x128xf32> to vector<8x32xf32>
    %135 = arith.negf %134 : vector<8x32xf32>
    %136 = math.exp %135 : vector<8x32xf32>
    %cst_32 = arith.constant 1.000000e+00 : f32
    %137 = vector.broadcast %cst_32 : f32 to vector<8x32xf32>
    %138 = arith.addf %137, %136 : vector<8x32xf32>
    %139 = arith.divf %137, %138 : vector<8x32xf32>
    %140 = vector.extract_strided_slice %127 {offsets = [0, 64], sizes = [8, 32], strides = [1, 1]} : vector<8x128xf32> to vector<8x32xf32>
    %141 = math.tanh %140 : vector<8x32xf32>
    %142 = vector.extract_strided_slice %127 {offsets = [0, 96], sizes = [8, 32], strides = [1, 1]} : vector<8x128xf32> to vector<8x32xf32>
    %143 = arith.negf %142 : vector<8x32xf32>
    %144 = math.exp %143 : vector<8x32xf32>
    %cst_33 = arith.constant 1.000000e+00 : f32
    %145 = vector.broadcast %cst_33 : f32 to vector<8x32xf32>
    %146 = arith.addf %145, %144 : vector<8x32xf32>
    %147 = arith.divf %145, %146 : vector<8x32xf32>
    %148 = arith.mulf %139, %121 : vector<8x32xf32>
    %149 = arith.mulf %133, %141 : vector<8x32xf32>
    %150 = arith.addf %148, %149 : vector<8x32xf32>
    %151 = math.tanh %150 : vector<8x32xf32>
    %152 = arith.mulf %147, %151 : vector<8x32xf32>
    %c32 = arith.constant 32 : index
    %c0_34 = arith.constant 0 : index
    %153 = vector.load %arg8[%c32, %c0_34] : memref<64x32xf32, #tpu.memory_space<vmem>>, vector<8x32xf32>
    tpu.vector_store %arg8[%c32, %c0_34], %152 {strides = array<i32>} : memref<64x32xf32, #tpu.memory_space<vmem>>, vector<8x32xf32>,
    %154 = vector.extract_strided_slice %5 {offsets = [40, 0], sizes = [8, 128], strides = [1, 1]} : vector<64x128xf32> to vector<8x128xf32>
    %cst_35 = arith.constant dense<0.000000e+00> : vector<8x128xf32>
    %155 = tpu.matmul %152, %6, %cst_35 {dimension_numbers = #tpu.dot_dimension_numbers<[1], [0], [0], [1], [0, 0, 1, 1], [], []>} : vector<8x32xf32>, vector<32x128xf32>, vector<8x128xf32> -> vector<8x128xf32>
    %156 = arith.addf %154, %155 : vector<8x128xf32>
    %157 = vector.extract_strided_slice %156 {offsets = [0, 0], sizes = [8, 32], strides = [1, 1]} : vector<8x128xf32> to vector<8x32xf32>
    %158 = arith.negf %157 : vector<8x32xf32>
    %159 = math.exp %158 : vector<8x32xf32>
    %cst_36 = arith.constant 1.000000e+00 : f32
    %160 = vector.broadcast %cst_36 : f32 to vector<8x32xf32>
    %161 = arith.addf %160, %159 : vector<8x32xf32>
    %162 = arith.divf %160, %161 : vector<8x32xf32>
    %163 = vector.extract_strided_slice %156 {offsets = [0, 32], sizes = [8, 32], strides = [1, 1]} : vector<8x128xf32> to vector<8x32xf32>
    %164 = arith.negf %163 : vector<8x32xf32>
    %165 = math.exp %164 : vector<8x32xf32>
    %cst_37 = arith.constant 1.000000e+00 : f32
    %166 = vector.broadcast %cst_37 : f32 to vector<8x32xf32>
    %167 = arith.addf %166, %165 : vector<8x32xf32>
    %168 = arith.divf %166, %167 : vector<8x32xf32>
    %169 = vector.extract_strided_slice %156 {offsets = [0, 64], sizes = [8, 32], strides = [1, 1]} : vector<8x128xf32> to vector<8x32xf32>
    %170 = math.tanh %169 : vector<8x32xf32>
    %171 = vector.extract_strided_slice %156 {offsets = [0, 96], sizes = [8, 32], strides = [1, 1]} : vector<8x128xf32> to vector<8x32xf32>
    %172 = arith.negf %171 : vector<8x32xf32>
    %173 = math.exp %172 : vector<8x32xf32>
    %cst_38 = arith.constant 1.000000e+00 : f32
    %174 = vector.broadcast %cst_38 : f32 to vector<8x32xf32>
    %175 = arith.addf %174, %173 : vector<8x32xf32>
    %176 = arith.divf %174, %175 : vector<8x32xf32>
    %177 = arith.mulf %168, %150 : vector<8x32xf32>
    %178 = arith.mulf %162, %170 : vector<8x32xf32>
    %179 = arith.addf %177, %178 : vector<8x32xf32>
    %180 = math.tanh %179 : vector<8x32xf32>
    %181 = arith.mulf %176, %180 : vector<8x32xf32>
    %c40 = arith.constant 40 : index
    %c0_39 = arith.constant 0 : index
    %182 = vector.load %arg8[%c40, %c0_39] : memref<64x32xf32, #tpu.memory_space<vmem>>, vector<8x32xf32>
    tpu.vector_store %arg8[%c40, %c0_39], %181 {strides = array<i32>} : memref<64x32xf32, #tpu.memory_space<vmem>>, vector<8x32xf32>,
    %183 = vector.extract_strided_slice %5 {offsets = [48, 0], sizes = [8, 128], strides = [1, 1]} : vector<64x128xf32> to vector<8x128xf32>
    %cst_40 = arith.constant dense<0.000000e+00> : vector<8x128xf32>
    %184 = tpu.matmul %181, %6, %cst_40 {dimension_numbers = #tpu.dot_dimension_numbers<[1], [0], [0], [1], [0, 0, 1, 1], [], []>} : vector<8x32xf32>, vector<32x128xf32>, vector<8x128xf32> -> vector<8x128xf32>
    %185 = arith.addf %183, %184 : vector<8x128xf32>
    %186 = vector.extract_strided_slice %185 {offsets = [0, 0], sizes = [8, 32], strides = [1, 1]} : vector<8x128xf32> to vector<8x32xf32>
    %187 = arith.negf %186 : vector<8x32xf32>
    %188 = math.exp %187 : vector<8x32xf32>
    %cst_41 = arith.constant 1.000000e+00 : f32
    %189 = vector.broadcast %cst_41 : f32 to vector<8x32xf32>
    %190 = arith.addf %189, %188 : vector<8x32xf32>
    %191 = arith.divf %189, %190 : vector<8x32xf32>
    %192 = vector.extract_strided_slice %185 {offsets = [0, 32], sizes = [8, 32], strides = [1, 1]} : vector<8x128xf32> to vector<8x32xf32>
    %193 = arith.negf %192 : vector<8x32xf32>
    %194 = math.exp %193 : vector<8x32xf32>
    %cst_42 = arith.constant 1.000000e+00 : f32
    %195 = vector.broadcast %cst_42 : f32 to vector<8x32xf32>
    %196 = arith.addf %195, %194 : vector<8x32xf32>
    %197 = arith.divf %195, %196 : vector<8x32xf32>
    %198 = vector.extract_strided_slice %185 {offsets = [0, 64], sizes = [8, 32], strides = [1, 1]} : vector<8x128xf32> to vector<8x32xf32>
    %199 = math.tanh %198 : vector<8x32xf32>
    %200 = vector.extract_strided_slice %185 {offsets = [0, 96], sizes = [8, 32], strides = [1, 1]} : vector<8x128xf32> to vector<8x32xf32>
    %201 = arith.negf %200 : vector<8x32xf32>
    %202 = math.exp %201 : vector<8x32xf32>
    %cst_43 = arith.constant 1.000000e+00 : f32
    %203 = vector.broadcast %cst_43 : f32 to vector<8x32xf32>
    %204 = arith.addf %203, %202 : vector<8x32xf32>
    %205 = arith.divf %203, %204 : vector<8x32xf32>
    %206 = arith.mulf %197, %179 : vector<8x32xf32>
    %207 = arith.mulf %191, %199 : vector<8x32xf32>
    %208 = arith.addf %206, %207 : vector<8x32xf32>
    %209 = math.tanh %208 : vector<8x32xf32>
    %210 = arith.mulf %205, %209 : vector<8x32xf32>
    %c48 = arith.constant 48 : index
    %c0_44 = arith.constant 0 : index
    %211 = vector.load %arg8[%c48, %c0_44] : memref<64x32xf32, #tpu.memory_space<vmem>>, vector<8x32xf32>
    tpu.vector_store %arg8[%c48, %c0_44], %210 {strides = array<i32>} : memref<64x32xf32, #tpu.memory_space<vmem>>, vector<8x32xf32>,
    %212 = vector.extract_strided_slice %5 {offsets = [56, 0], sizes = [8, 128], strides = [1, 1]} : vector<64x128xf32> to vector<8x128xf32>
    %cst_45 = arith.constant dense<0.000000e+00> : vector<8x128xf32>
    %213 = tpu.matmul %210, %6, %cst_45 {dimension_numbers = #tpu.dot_dimension_numbers<[1], [0], [0], [1], [0, 0, 1, 1], [], []>} : vector<8x32xf32>, vector<32x128xf32>, vector<8x128xf32> -> vector<8x128xf32>
    %214 = arith.addf %212, %213 : vector<8x128xf32>
    %215 = vector.extract_strided_slice %214 {offsets = [0, 0], sizes = [8, 32], strides = [1, 1]} : vector<8x128xf32> to vector<8x32xf32>
    %216 = arith.negf %215 : vector<8x32xf32>
    %217 = math.exp %216 : vector<8x32xf32>
    %cst_46 = arith.constant 1.000000e+00 : f32
    %218 = vector.broadcast %cst_46 : f32 to vector<8x32xf32>
    %219 = arith.addf %218, %217 : vector<8x32xf32>
    %220 = arith.divf %218, %219 : vector<8x32xf32>
    %221 = vector.extract_strided_slice %214 {offsets = [0, 32], sizes = [8, 32], strides = [1, 1]} : vector<8x128xf32> to vector<8x32xf32>
    %222 = arith.negf %221 : vector<8x32xf32>
    %223 = math.exp %222 : vector<8x32xf32>
    %cst_47 = arith.constant 1.000000e+00 : f32
    %224 = vector.broadcast %cst_47 : f32 to vector<8x32xf32>
    %225 = arith.addf %224, %223 : vector<8x32xf32>
    %226 = arith.divf %224, %225 : vector<8x32xf32>
    %227 = vector.extract_strided_slice %214 {offsets = [0, 64], sizes = [8, 32], strides = [1, 1]} : vector<8x128xf32> to vector<8x32xf32>
    %228 = math.tanh %227 : vector<8x32xf32>
    %229 = vector.extract_strided_slice %214 {offsets = [0, 96], sizes = [8, 32], strides = [1, 1]} : vector<8x128xf32> to vector<8x32xf32>
    %230 = arith.negf %229 : vector<8x32xf32>
    %231 = math.exp %230 : vector<8x32xf32>
    %cst_48 = arith.constant 1.000000e+00 : f32
    %232 = vector.broadcast %cst_48 : f32 to vector<8x32xf32>
    %233 = arith.addf %232, %231 : vector<8x32xf32>
    %234 = arith.divf %232, %233 : vector<8x32xf32>
    %235 = arith.mulf %226, %208 : vector<8x32xf32>
    %236 = arith.mulf %220, %228 : vector<8x32xf32>
    %237 = arith.addf %235, %236 : vector<8x32xf32>
    %238 = math.tanh %237 : vector<8x32xf32>
    %239 = arith.mulf %234, %238 : vector<8x32xf32>
    %c56 = arith.constant 56 : index
    %c0_49 = arith.constant 0 : index
    %240 = vector.load %arg8[%c56, %c0_49] : memref<64x32xf32, #tpu.memory_space<vmem>>, vector<8x32xf32>
    tpu.vector_store %arg8[%c56, %c0_49], %239 {strides = array<i32>} : memref<64x32xf32, #tpu.memory_space<vmem>>, vector<8x32xf32>,
    %c0_50 = arith.constant 0 : index
    %c0_51 = arith.constant 0 : index
    %241 = vector.load %arg8[%c0_50, %c0_51] : memref<64x32xf32, #tpu.memory_space<vmem>>, vector<64x32xf32>
    %c0_52 = arith.constant 0 : index
    %c0_53 = arith.constant 0 : index
    %242 = vector.load %arg5[%c0_52, %c0_53] : memref<32x8xf32, #tpu.memory_space<vmem>>, vector<32x8xf32>
    %cst_54 = arith.constant dense<0.000000e+00> : vector<64x8xf32>
    %243 = tpu.matmul %241, %242, %cst_54 {dimension_numbers = #tpu.dot_dimension_numbers<[1], [0], [0], [1], [0, 0, 1, 1], [], []>} : vector<64x32xf32>, vector<32x8xf32>, vector<64x8xf32> -> vector<64x8xf32>
    %c0_55 = arith.constant 0 : index
    %c0_56 = arith.constant 0 : index
    %244 = vector.load %arg6[%c0_55, %c0_56] : memref<1x8xf32, #tpu.memory_space<vmem>>, vector<1x8xf32>
    %245 = vector.broadcast %244 : vector<1x8xf32> to vector<64x8xf32>
    %246 = arith.addf %243, %245 : vector<64x8xf32>
    %c0_57 = arith.constant 0 : index
    %c0_58 = arith.constant 0 : index
    %247 = vector.load %arg7[%c0_57, %c0_58] : memref<64x8xf32, #tpu.memory_space<vmem>>, vector<64x8xf32>
    tpu.vector_store %arg7[%c0_57, %c0_58], %246 {strides = array<i32>} : memref<64x8xf32, #tpu.memory_space<vmem>>, vector<64x8xf32>,
    return
  }
  func.func @transform_0(%arg0: i32) -> (i32, i32) {
    %c0_i32 = arith.constant 0 : i32
    %c0_i32_0 = arith.constant 0 : i32
    %c0_i32_1 = arith.constant 0 : i32
    return %c0_i32, %c0_i32_0 : i32, i32
  }
  func.func @transform_1(%arg0: i32) -> (i32, i32) {
    %c0_i32 = arith.constant 0 : i32
    %c0_i32_0 = arith.constant 0 : i32
    %c0_i32_1 = arith.constant 0 : i32
    return %c0_i32, %c0_i32_0 : i32, i32
  }
  func.func @transform_2(%arg0: i32) -> (i32, i32) {
    %c0_i32 = arith.constant 0 : i32
    %c0_i32_0 = arith.constant 0 : i32
    %c0_i32_1 = arith.constant 0 : i32
    return %c0_i32, %c0_i32_0 : i32, i32
  }
  func.func @transform_3(%arg0: i32) -> (i32, i32) {
    %c0_i32 = arith.constant 0 : i32
    %c0_i32_0 = arith.constant 0 : i32
    %c0_i32_1 = arith.constant 0 : i32
    return %c0_i32, %c0_i32_0 : i32, i32
  }
  func.func @transform_4(%arg0: i32) -> (i32, i32) {
    %c0_i32 = arith.constant 0 : i32
    %c0_i32_0 = arith.constant 0 : i32
    %c0_i32_1 = arith.constant 0 : i32
    return %c0_i32, %c0_i32_0 : i32, i32
  }
  func.func @transform_5(%arg0: i32) -> (i32, i32) {
    %c0_i32 = arith.constant 0 : i32
    %c0_i32_0 = arith.constant 0 : i32
    %c0_i32_1 = arith.constant 0 : i32
    return %c0_i32, %c0_i32_0 : i32, i32
  }
  func.func @transform_6(%arg0: i32) -> (i32, i32) {
    %c0_i32 = arith.constant 0 : i32
    %c0_i32_0 = arith.constant 0 : i32
    %c0_i32_1 = arith.constant 0 : i32
    return %c0_i32, %c0_i32_0 : i32, i32
  }
}

</mosaic_0001>

<bundles_post_ra>
// kernel: tpu_custom_call.1
= control target key start
LH: loop header
LB: loop body
LE: loop exit
PB: predicated region body
PF: predicated region fallthrough
CT: control target
= control target key end

     0   :  { %11 = vsyncpa [#allocation4], 0  ;;  %s1897_s0 = inlined_call_operand.hbm [shape: f32[64,64], index: 0, kind: input, shape index: {}]   ;;  %s1898_s1 = inlined_call_operand.hbm [shape: f32[64,128], index: 1, kind: input, shape index: {}]   ;;  %s1899_s2 = inlined_call_operand.vmem [shape: f32[32,128], index: 2, kind: input, shape index: {}]   ;;  %s1900_s3 = inlined_call_operand.vmem [shape: f32[1,128], index: 3, kind: input, shape index: {}]   ;;  %s1901_s4 = inlined_call_operand.vmem [shape: f32[32,8], index: 4, kind: input, shape index: {}]   ;;  %s1902_s5 = inlined_call_operand.vmem [shape: f32[1,8], index: 5, kind: input, shape index: {}]   ;;  %s1903_s6 = inlined_call_operand.vmem [shape: f32[64,8], index: 6, kind: output, shape index: {}]  }
   0x1   :  { %12 = vsyncpa [#allocation6], 0  ;;  %s1619_s21 = smov [#allocation3]   ;;  %s1571_s25 = scalar_lea.hbm %s1897_s0, 1024 }
   0x2   :  { %s18_s22 = sshll.u32 %s1619_s21, 4  ;;  %p1572_p0 = scmp.ne.s32.totalorder %s1897_s0, %s1571_s25  ;;  %s19_s22 = int_to_ptr.vmem [resolvable:$true] %s18_s22 }
   0x3   :  { %p1575_p1 = scmp.lt.u32.totalorder %s1571_s25, %s1897_s0 }
   0x5   :  { %p1577_p2 = pnand %p1575_p1, %p1572_p0 }
   0x7   :  { %1580 = shalt.err (!%p1577_p2)
}
   0x8   :  { %s1581_s30 = scalar_lea.vmem %s19_s22, 1024  ;;  %p1586_p4 = scmp.lt.s32.totalorder %s19_s22, %s19_s22 }
   0x9   :  { %p1582_p3 = scmp.ne.s32.totalorder %s19_s22, %s1581_s30  ;;  %p1587_p5 = scmp.lt.s32.totalorder %s1581_s30, %s1581_s30 }
   0xb   :  { %p1588_p6 = por %p1587_p5, %p1586_p4 }
   0xd   :  { %p1589_p7 = pnand %p1588_p6, %p1582_p3 }
   0xf   :  { %1592 = shalt.err (!%p1589_p7)
}
  0x10   :  { %s1620_s7 = smov 128   ;;  %s1621_s8 = smov 8  }
  0x11   :  { %24 = dma.hbm_to_vmem [thread:$0]  %s1897_s0, 1024, %s19_s22, [#allocation4], %s1620_s7, %s1620_s7, %s1621_s8  }
  0x12   :  { %s1622_s11 = smov [#allocation5]   ;;  %s1593_s15 = scalar_lea.hbm %s1898_s1, 1024 }
  0x13   :  { %s30_s12 = sshll.u32 %s1622_s11, 4  ;;  %p1594_p8 = scmp.ne.s32.totalorder %s1898_s1, %s1593_s15  ;;  %s31_s12 = int_to_ptr.vmem [resolvable:$true] %s30_s12 }
  0x14   :  { %p1597_p9 = scmp.lt.u32.totalorder %s1593_s15, %s1898_s1 }
  0x16   :  { %p1599_p10 = pnand %p1597_p9, %p1594_p8 }
  0x18   :  { %1602 = shalt.err (!%p1599_p10)
}
  0x19   :  { %s1603_s20 = scalar_lea.vmem %s31_s12, 1024  ;;  %p1608_p12 = scmp.lt.s32.totalorder %s31_s12, %s31_s12 }
  0x1a   :  { %p1604_p11 = scmp.ne.s32.totalorder %s31_s12, %s1603_s20  ;;  %p1609_p13 = scmp.lt.s32.totalorder %s1603_s20, %s1603_s20 }
  0x1c   :  { %p1610_p0 = por %p1609_p13, %p1608_p12 }
  0x1e   :  { %p1611_p1 = pnand %p1610_p0, %p1604_p11 }
  0x20   :  { %1614 = shalt.err (!%p1611_p1)
}
  0x21   :  { %36 = dma.hbm_to_vmem [thread:$0]  %s1898_s1, 1024, %s31_s12, [#allocation6], %s1620_s7, %s1620_s7, %s1621_s8  }
  0x22   :  { %1615 = dma.done.wait [#allocation4], 1024  }
  0x23   :  { %1616 = vsyncadd [#allocation4], 4294966272 }
  0x24   :  { %1617 = dma.done.wait [#allocation6], 1024  }
  0x25   :  { %1618 = vsyncadd [#allocation6], 4294966272  ;;  %v1623_v0 = vmov 0.0|0.0   ;;  %vm1624_vm0 = vmmov 0   ;;  %v1625_v1 = vmov 0.0   ;;  %v59_v2 = vld [vmem:[#allocation5] sm:$0xff] }
  0x26   :  { %1448 = vmatprep.subr.bf16.mxu1 %v1623_v0  ;;  %1337 = vmatprep.mubr.msk.f32.mxu1 %vm1624_vm0, %v1625_v1  ;;  %v60_v3 = vld [vmem:[#allocation5 + $0x8] sm:$0xff]  ;;  %v61_v4 = vld [vmem:[#allocation5 + $0x10] sm:$0xff]  ;;  %vm74_vm1 = vcmask 523264   ;;  %v62_v6 = vld [vmem:[#allocation5 + $0x18] sm:$0xff]  ;;  %s1627_s30 = smov 32   ;;  %vm208_vm2 = vcmask 261120  }
  0x27   :  { %v1426_v5 = vpack.c.bf16 %v60_v3, %v59_v2  ;;  %v1430_v7 = vpack.c.bf16 %v62_v6, %v61_v4  ;;  %v63_v8 = vld [vmem:[#allocation5 + $0x20] sm:$0xff]  ;;  %v64_v9 = vld [vmem:[#allocation5 + $0x28] sm:$0xff]  ;;  %v206_v15 = vld [vmem:[%s1899_s2 + $0x10] sm:$0xff]  ;;  %vm1174_vm3 = vcmask 64512  }
  0x28   :  { %v51_v10 = vld [vmem:[#allocation3] sm:$0xff]  ;;  %v205_v12 = vld [vmem:[%s1899_s2 + $0x8] sm:$0xff]  ;;  %v1434_v14 = vpack.c.bf16 %v64_v9, %v63_v8  ;;  %v207_v16 = vld [vmem:[%s1899_s2 + $0x18] sm:$0xff] }
  0x29   :  { %1427 = vmatprep.subr.bf16.mxu0 %v1426_v5  ;;  %1306 = vmatprep.mubr.msk.f32.mxu0 %vm74_vm1, %v51_v10  ;;  %v204_v11 = vld [vmem:[%s1899_s2] sm:$0xff]  ;;  %v65_v17 = vld [vmem:[#allocation5 + $0x30] sm:$0xff]  ;;  %v66_v18 = vld [vmem:[#allocation5 + $0x38] sm:$0xff]  ;;  %v1707_v19 = vpack.c.bf16 %v207_v16, %v206_v15 }
  0x2a   :  { %1429 = vmatpush3.bf16.msra.mxu0 %v1426_v5  ;;  %v1697_v13 = vpack.c.bf16 %v205_v12, %v204_v11  ;;  %v1438_v20 = vpack.c.bf16 %v66_v18, %v65_v17  ;;  %v52_v21 = vld [vmem:[#allocation3 + $0x8] sm:$0xff]  ;;  %v53_v22 = vld [vmem:[#allocation3 + $0x10] sm:$0xff]  ;;  %v54_v23 = vld [vmem:[#allocation3 + $0x18] sm:$0xff] }
  0x2b   :  { %1431 = vmatprep.subr.bf16.mxu0 %v1430_v7  ;;  %v55_v24 = vld [vmem:[#allocation3 + $0x20] sm:$0xff]  ;;  %v56_v25 = vld [vmem:[#allocation3 + $0x28] sm:$0xff]  ;;  %v57_v26 = vld [vmem:[#allocation3 + $0x30] sm:$0xff] }
  0x2c   :  { %1450 = vmatpush3.bf16.msra.mxu1 %v1697_v13  ;;  %v58_v27 = vld [vmem:[#allocation3 + $0x38] sm:$0xff]  ;;  %v1189_v28 = vld [vmem:[%s1900_s3] ss:$0 sm:$0xff]  ;;  %s1626_s3 = smov 64  }
  0x2d   :  { %1451 = vmatprep.subr.bf16.mxu1 %v1623_v0 }
  0x2e   :  { %1433 = vmatpush3.bf16.msra.mxu0 %v1430_v7 }
  0x2f   :  { %1435 = vmatprep.subr.bf16.mxu0 %v1434_v14 }
  0x30   :  { %1453 = vmatpush3.bf16.msra.mxu1 %v1707_v19 }
  0x31   :  { %1454 = vmatprep.subr.bf16.mxu1 %v1623_v0 }
  0x32   :  { %1437 = vmatpush3.bf16.msra.mxu0 %v1434_v14 }
  0x33   :  { %1439 = vmatprep.subr.bf16.mxu0 %v1438_v20 }
  0x36   :  { %1441 = vmatpush3.bf16.msra.mxu0 %v1438_v20 }
  0x37   :  { %1442 = vmatprep.subr.bf16.mxu0 %v1623_v0 }
  0x39   :  { %1307 = vmatmul.mubr.msk.f32.vlgmr.msra.gmra.mrb[0].mxu0 %vm74_vm1, %v52_v21 }
  0x3a   :  { %1444 = vmatpush3.bf16.msra.mxu0 %v1697_v13  ;;  %1309 = vmatprep.mubr.msk.f32.mxu0 %vm74_vm1, %v53_v22 }
  0x3b   :  { %1445 = vmatprep.subr.bf16.mxu0 %v1623_v0 }
  0x3d   :  { %1310 = vmatmul.mubr.msk.f32.gmra.mrb[2].mxu0 %vm74_vm1, %v54_v23 }
  0x3e   :  { %1312 = vmatprep.mubr.msk.f32.mxu0 %vm74_vm1, %v55_v24  ;;  %1447 = vmatpush3.bf16.msra.mxu0 %v1707_v19 }
  0x3f   :  { %1460 = vmatprep.subr.bf16.mxu0 %v1623_v0 }
  0x41   :  { %1313 = vmatmul.mubr.msk.f32.gmra.mrb[4].mxu0 %vm74_vm1, %v56_v25 }
  0x42   :  { %1315 = vmatprep.mubr.msk.f32.mxu0 %vm74_vm1, %v57_v26 }
  0x45   :  { %1316 = vmatmul.mubr.msk.f32.gmra.mrb[6].mxu0 %vm74_vm1, %v58_v27 }
  0x46   :  { %1326 = vmatprep.mubr.msk.f32.mxu0 %vm1624_vm0, %v1625_v1 }
  0x49   :  { %1327 = vmatmul.mubr.f32.vlgmr.msra.gmra.mrb[8].mxu0 %v1625_v1 }
  0x4a   :  { %1462 = vmatpush3.bf16.msra.mxu0 %v1697_v13  ;;  %1359 = vmatprep.mubr.msk.f32.mxu0 %vm1624_vm0, %v1625_v1 }
  0x4b   :  { %1463 = vmatprep.subr.bf16.mxu0 %v1623_v0 }
  0x4e   :  { %1465 = vmatpush3.bf16.msra.mxu0 %v1707_v19 }
  0x4f   :  { %1472 = vmatprep.subr.bf16.mxu0 %v1623_v0 }
 0x10c   :  { %v1308_v29 = vpop.f32.mrb[0].mxu0 }
 0x10d   :  { %v171_v30 = vadd.f32 %v1308_v29, %v1189_v28  ;;  %v165_v31 = vpop.f32.mrb[1].mxu0 }
 0x10e   :  { %v166_v44 = vadd.f32 %v1189_v28, %v165_v31 }
 0x110   :  { %v1311_v32 = vpop.f32.mrb[2].mxu0 }
 0x111   :  { %v1735_v33 = vadd.f32 %v1311_v32, %v1189_v28  ;;  %v175_v34 = vpop.f32.mrb[3].mxu0 }
 0x112   :  { %v1737_v35 = vadd.f32 %v1189_v28, %v175_v34 }
 0x114   :  { %v1314_v36 = vpop.f32.mrb[4].mxu0 }
 0x115   :  { %v1739_v37 = vadd.f32 %v1314_v36, %v1189_v28  ;;  %v185_v38 = vpop.f32.mrb[5].mxu0 }
 0x116   :  { %v1741_v39 = vadd.f32 %v1189_v28, %v185_v38 }
 0x118   :  { %v1317_v40 = vpop.f32.mrb[6].mxu0 }
 0x119   :  { %v1743_v41 = vadd.f32 %v1317_v40, %v1189_v28  ;;  %v195_v42 = vpop.f32.mrb[7].mxu0 }
 0x11a   :  { %v1745_v43 = vadd.f32 %v1189_v28, %v195_v42 }
 0x11c   :  { %v278_v45 = vpop.f32.mrb[8].mxu0 }
 0x11d   :  { %v282_v46 = vadd.f32 %v278_v45, %v166_v44  ;;  %v1328_v47 = vpop.f32.mrb[9].mxu0 }
 0x11f   :  { %1507 = vtanh.f32 %v282_v46  ;;  %v1198_v49 = vmul.f32 -1.442695, %v282_v46 }
 0x121   :  { %1509 = vpow2.f32 %v1198_v49 }
 0x129   :  { %v1508_v48 = vpop.eup %1507 }
 0x12a   :  { %292 = vrot.lane.b32.xlu0 %v1508_v48, %s1626_s3 }
 0x12b   :  { %v1510_v50 = vpop.eup %1509 }
 0x12c   :  { %v286_v51 = vadd.f32 1.0, %v1510_v50 }
 0x12e   :  { %1511 = vrcp.f32 %v286_v51 }
 0x138   :  { %v1512_v52 = vpop.eup %1511 }
 0x139   :  { %v290_v55 = vmul.f32 0.0, %v1512_v52 }
 0x19c   :  { %v293_v53 = vpop.permute.xlu0 %292 }
 0x19d   :  { %v295_v54 = vmul.f32 %v1512_v52, %v293_v53 }
 0x19f   :  { %297 = vrot.lane.b32.xlu0 %v295_v54, %s1627_s30 }
 0x211   :  { %v298_v56 = vpop.permute.xlu0 %297 }
 0x212   :  { %v300_v57 = vadd.f32 %v298_v56, %v290_v55 }
 0x214   :  { %1513 = vtanh.f32 %v300_v57 }
 0x21e   :  { %v1514_v58 = vpop.eup %1513 }
 0x21f   :  { %303 = vrot.lane.b32.xlu1 %v1514_v58, %s1626_s3 }
 0x291   :  { %v304_v59 = vpop.permute.xlu1 %303 }
 0x292   :  { %v306_v60 = vmul.f32 %v1512_v52, %v304_v59 }
 0x294   :  { %308 = vrot.lane.b32.xlu1 %v306_v60, %s1627_s30 }
 0x306   :  { %v309_v61 = vpop.permute.xlu1 %308 }
 0x307   :  { %311 = vst.msk [vmem:[#allocation2] sm:$0xff] %vm208_vm2, %v309_v61  ;;  %1338 = vmatmul.mubr.msk.f32.vlgmr.msra.gmra.mrb[0].mxu1 %vm208_vm2, %v309_v61 }
 0x308   :  { %1456 = vmatpush3.bf16.msra.mxu1 %v1697_v13  ;;  %1348 = vmatprep.mubr.msk.f32.mxu1 %vm1624_vm0, %v1625_v1 }
 0x309   :  { %1457 = vmatprep.subr.bf16.mxu1 %v1623_v0 }
 0x30c   :  { %1459 = vmatpush3.bf16.msra.mxu1 %v1707_v19 }
 0x30d   :  { %1466 = vmatprep.subr.bf16.mxu1 %v1623_v0 }
 0x3da   :  { %v380_v62 = vpop.f32.mrb[0].mxu1 }
 0x3db   :  { %v384_v63 = vadd.f32 %v380_v62, %v171_v30  ;;  %v1339_v2 = vpop.f32.mrb[1].mxu1 }
 0x3dd   :  { %1515 = vtanh.f32 %v384_v63  ;;  %v1200_v4 = vmul.f32 -1.442695, %v384_v63 }
 0x3df   :  { %1517 = vpow2.f32 %v1200_v4 }
 0x3e7   :  { %v1516_v3 = vpop.eup %1515 }
 0x3e8   :  { %394 = vrot.lane.b32.xlu0 %v1516_v3, %s1626_s3 }
 0x3e9   :  { %v1518_v5 = vpop.eup %1517 }
 0x3ea   :  { %v388_v6 = vadd.f32 1.0, %v1518_v5 }
 0x3ec   :  { %1519 = vrcp.f32 %v388_v6 }
 0x3f6   :  { %v1520_v7 = vpop.eup %1519 }
 0x3f7   :  { %v392_v10 = vmul.f32 %v1520_v7, %v300_v57 }
 0x45a   :  { %v395_v8 = vpop.permute.xlu0 %394 }
 0x45b   :  { %v397_v9 = vmul.f32 %v1520_v7, %v395_v8 }
 0x45d   :  { %399 = vrot.lane.b32.xlu1 %v397_v9, %s1627_s30 }
 0x4cf   :  { %v400_v11 = vpop.permute.xlu1 %399 }
 0x4d0   :  { %v402_v12 = vadd.f32 %v400_v11, %v392_v10 }
 0x4d2   :  { %1521 = vtanh.f32 %v402_v12 }
 0x4dc   :  { %v1522_v14 = vpop.eup %1521 }
 0x4dd   :  { %405 = vrot.lane.b32.xlu0 %v1522_v14, %s1626_s3 }
 0x54f   :  { %v406_v15 = vpop.permute.xlu0 %405 }
 0x550   :  { %v408_v16 = vmul.f32 %v1520_v7, %v406_v15 }
 0x552   :  { %410 = vrot.lane.b32.xlu1 %v408_v16, %s1627_s30 }
 0x5c4   :  { %v411_v17 = vpop.permute.xlu1 %410 }
 0x5c5   :  { %413 = vst.msk [vmem:[#allocation2 + $0x8] sm:$0xff] %vm208_vm2, %v411_v17  ;;  %1349 = vmatmul.mubr.msk.f32.vlgmr.msra.gmra.mrb[2].mxu1 %vm208_vm2, %v411_v17 }
 0x5c6   :  { %1468 = vmatpush3.bf16.msra.mxu1 %v1697_v13  ;;  %1370 = vmatprep.mubr.msk.f32.mxu1 %vm1624_vm0, %v1625_v1 }
 0x5c7   :  { %1469 = vmatprep.subr.bf16.mxu1 %v1623_v0 }
 0x5ca   :  { %1471 = vmatpush3.bf16.msra.mxu1 %v1707_v19 }
 0x5cb   :  { %1478 = vmatprep.subr.bf16.mxu1 %v1623_v0 }
 0x698   :  { %v482_v18 = vpop.f32.mrb[2].mxu1 }
 0x699   :  { %v486_v20 = vadd.f32 %v482_v18, %v1737_v35  ;;  %v1350_v21 = vpop.f32.mrb[3].mxu1 }
 0x69b   :  { %1523 = vtanh.f32 %v486_v20  ;;  %v1202_v23 = vmul.f32 -1.442695, %v486_v20 }
 0x69d   :  { %1525 = vpow2.f32 %v1202_v23 }
 0x6a5   :  { %v1524_v22 = vpop.eup %1523 }
 0x6a6   :  { %496 = vrot.lane.b32.xlu0 %v1524_v22, %s1626_s3  ;;  %v1035_v22 = vld [vmem:[%s1901_s4 + $0x8] sm:$0xff] }
 0x6a7   :  { %v1526_v24 = vpop.eup %1525 }
 0x6a8   :  { %v490_v25 = vadd.f32 1.0, %v1526_v24 }
 0x6aa   :  { %1527 = vrcp.f32 %v490_v25 }
 0x6b4   :  { %v1528_v26 = vpop.eup %1527 }
 0x6b5   :  { %v494_v29 = vmul.f32 %v1528_v26, %v402_v12 }
 0x718   :  { %v497_v27 = vpop.permute.xlu0 %496 }
 0x719   :  { %v499_v28 = vmul.f32 %v1528_v26, %v497_v27  ;;  %v1036_v27 = vld [vmem:[%s1901_s4 + $0x10] sm:$0xff] }
 0x71b   :  { %501 = vrot.lane.b32.xlu1 %v499_v28, %s1627_s30  ;;  %v1037_v28 = vld [vmem:[%s1901_s4 + $0x18] sm:$0xff] }
 0x78d   :  { %v502_v30 = vpop.permute.xlu1 %501 }
 0x78e   :  { %v504_v31 = vadd.f32 %v502_v30, %v494_v29  ;;  %v1494_v29 = vpack.c.bf16 %v1037_v28, %v1036_v27 }
 0x790   :  { %1529 = vtanh.f32 %v504_v31 }
 0x79a   :  { %v1530_v32 = vpop.eup %1529 }
 0x79b   :  { %507 = vrot.lane.b32.xlu0 %v1530_v32, %s1626_s3  ;;  %v1027_v32 = vld [vmem:[#allocation2 + $0x8] sm:$0xff] }
 0x80d   :  { %v508_v34 = vpop.permute.xlu0 %507 }
 0x80e   :  { %v510_v35 = vmul.f32 %v1528_v26, %v508_v34 }
 0x810   :  { %512 = vrot.lane.b32.xlu1 %v510_v35, %s1627_s30 }
 0x882   :  { %v513_v36 = vpop.permute.xlu1 %512 }
 0x883   :  { %515 = vst.msk [vmem:[#allocation2 + $0x10] sm:$0xff] %vm208_vm2, %v513_v36  ;;  %1360 = vmatmul.mubr.msk.f32.vlgmr.msra.gmra.mrb[10].mxu0 %vm208_vm2, %v513_v36 }
 0x884   :  { %1474 = vmatpush3.bf16.msra.mxu0 %v1697_v13  ;;  %1381 = vmatprep.mubr.msk.f32.mxu0 %vm1624_vm0, %v1625_v1 }
 0x885   :  { %1475 = vmatprep.subr.bf16.mxu0 %v1623_v0 }
 0x888   :  { %1477 = vmatpush3.bf16.msra.mxu0 %v1707_v19 }
 0x889   :  { %1484 = vmatprep.subr.bf16.mxu0 %v1623_v0 }
 0x88a   :  { %v1028_v34 = vld [vmem:[#allocation2 + $0x10] sm:$0xff] }
 0x956   :  { %v584_v38 = vpop.f32.mrb[10].mxu0 }
 0x957   :  { %v588_v40 = vadd.f32 %v584_v38, %v1735_v33  ;;  %v1361_v42 = vpop.f32.mrb[11].mxu0 }
 0x959   :  { %1531 = vtanh.f32 %v588_v40  ;;  %v1204_v45 = vmul.f32 -1.442695, %v588_v40 }
 0x95b   :  { %1533 = vpow2.f32 %v1204_v45  ;;  %v1840_v45 = vld [vmem:[%s1902_s5] ss:$0 sm:$0xff] }
 0x963   :  { %v1532_v44 = vpop.eup %1531 }
 0x964   :  { %598 = vrot.lane.b32.xlu0 %v1532_v44, %s1626_s3 }
 0x965   :  { %v1534_v46 = vpop.eup %1533 }
 0x966   :  { %v592_v47 = vadd.f32 1.0, %v1534_v46 }
 0x968   :  { %1535 = vrcp.f32 %v592_v47 }
 0x972   :  { %v1536_v48 = vpop.eup %1535 }
 0x973   :  { %v596_v51 = vmul.f32 %v1536_v48, %v504_v31  ;;  %v1026_v31 = vld [vmem:[#allocation2] sm:$0xff] }
 0x9d6   :  { %v599_v49 = vpop.permute.xlu0 %598 }
 0x9d7   :  { %v601_v50 = vmul.f32 %v1536_v48, %v599_v49 }
 0x9d9   :  { %603 = vrot.lane.b32.xlu1 %v601_v50, %s1627_s30 }
 0xa4b   :  { %v604_v52 = vpop.permute.xlu1 %603 }
 0xa4c   :  { %v606_v53 = vadd.f32 %v604_v52, %v596_v51 }
 0xa4e   :  { %1537 = vtanh.f32 %v606_v53 }
 0xa58   :  { %v1538_v33 = vpop.eup %1537 }
 0xa59   :  { %609 = vrot.lane.b32.xlu0 %v1538_v33, %s1626_s3 }
 0xacb   :  { %v610_v54 = vpop.permute.xlu0 %609 }
 0xacc   :  { %v612_v55 = vmul.f32 %v1536_v48, %v610_v54 }
 0xace   :  { %614 = vrot.lane.b32.xlu1 %v612_v55, %s1627_s30 }
 0xb40   :  { %v615_v56 = vpop.permute.xlu1 %614 }
 0xb41   :  { %617 = vst.msk [vmem:[#allocation2 + $0x18] sm:$0xff] %vm208_vm2, %v615_v56  ;;  %1371 = vmatmul.mubr.msk.f32.vlgmr.msra.gmra.mrb[4].mxu1 %vm208_vm2, %v615_v56 }
 0xb42   :  { %1480 = vmatpush3.bf16.msra.mxu1 %v1697_v13  ;;  %1392 = vmatprep.mubr.msk.f32.mxu1 %vm1624_vm0, %v1625_v1 }
 0xb43   :  { %1481 = vmatprep.subr.bf16.mxu1 %v1623_v0 }
 0xb46   :  { %1483 = vmatpush3.bf16.msra.mxu1 %v1707_v19 }
 0xb48   :  { %v1029_v35 = vld [vmem:[#allocation2 + $0x18] sm:$0xff] }
 0xc14   :  { %v686_v57 = vpop.f32.mrb[4].mxu1 }
 0xc15   :  { %v690_v58 = vadd.f32 %v686_v57, %v1741_v39  ;;  %v1372_v59 = vpop.f32.mrb[5].mxu1 }
 0xc17   :  { %1539 = vtanh.f32 %v690_v58  ;;  %v1206_v61 = vmul.f32 -1.442695, %v690_v58 }
 0xc19   :  { %1541 = vpow2.f32 %v1206_v61 }
 0xc21   :  { %v1540_v60 = vpop.eup %1539 }
 0xc22   :  { %700 = vrot.lane.b32.xlu0 %v1540_v60, %s1626_s3 }
 0xc23   :  { %v1542_v62 = vpop.eup %1541 }
 0xc24   :  { %v694_v63 = vadd.f32 1.0, %v1542_v62 }
 0xc26   :  { %1543 = vrcp.f32 %v694_v63 }
 0xc30   :  { %v1544_v2 = vpop.eup %1543 }
 0xc31   :  { %v698_v5 = vmul.f32 %v1544_v2, %v606_v53 }
 0xc94   :  { %v701_v3 = vpop.permute.xlu0 %700 }
 0xc95   :  { %v703_v4 = vmul.f32 %v1544_v2, %v701_v3 }
 0xc97   :  { %705 = vrot.lane.b32.xlu1 %v703_v4, %s1627_s30 }
 0xd09   :  { %v706_v6 = vpop.permute.xlu1 %705 }
 0xd0a   :  { %v708_v7 = vadd.f32 %v706_v6, %v698_v5 }
 0xd0c   :  { %1545 = vtanh.f32 %v708_v7 }
 0xd16   :  { %v1546_v39 = vpop.eup %1545 }
 0xd17   :  { %711 = vrot.lane.b32.xlu0 %v1546_v39, %s1626_s3 }
 0xd89   :  { %v712_v8 = vpop.permute.xlu0 %711 }
 0xd8a   :  { %v714_v9 = vmul.f32 %v1544_v2, %v712_v8 }
 0xd8c   :  { %716 = vrot.lane.b32.xlu1 %v714_v9, %s1627_s30 }
 0xdfe   :  { %v717_v10 = vpop.permute.xlu1 %716 }
 0xdff   :  { %719 = vst.msk [vmem:[#allocation2 + $0x20] sm:$0xff] %vm208_vm2, %v717_v10  ;;  %1382 = vmatmul.mubr.msk.f32.vlgmr.msra.gmra.mrb[12].mxu0 %vm208_vm2, %v717_v10 }
 0xe00   :  { %1486 = vmatpush3.bf16.msra.mxu0 %v1697_v13  ;;  %1403 = vmatprep.mubr.msk.f32.mxu0 %vm1624_vm0, %v1625_v1 }
 0xe01   :  { %1487 = vmatprep.subr.bf16.mxu0 %v1623_v0 }
 0xe04   :  { %1489 = vmatpush3.bf16.msra.mxu0 %v1707_v19 }
 0xe06   :  { %v1030_v36 = vld [vmem:[#allocation2 + $0x20] sm:$0xff] }
 0xed2   :  { %v788_v11 = vpop.f32.mrb[12].mxu0 }
 0xed3   :  { %v792_v12 = vadd.f32 %v788_v11, %v1739_v37  ;;  %v1383_v14 = vpop.f32.mrb[13].mxu0  ;;  %v1034_v37 = vld [vmem:[%s1901_s4] sm:$0xff] }
 0xed4   :  { %v1490_v23 = vpack.c.bf16 %v1035_v22, %v1034_v37 }
 0xed5   :  { %1547 = vtanh.f32 %v792_v12  ;;  %v1208_v16 = vmul.f32 -1.442695, %v792_v12 }
 0xed6   :  { %1491 = vmatprep.subr.bf16.mxu1 %v1490_v23 }
 0xed7   :  { %1549 = vpow2.f32 %v1208_v16 }
 0xedf   :  { %v1548_v15 = vpop.eup %1547 }
 0xee0   :  { %802 = vrot.lane.b32.xlu0 %v1548_v15, %s1626_s3 }
 0xee1   :  { %v1550_v17 = vpop.eup %1549 }
 0xee2   :  { %v796_v18 = vadd.f32 1.0, %v1550_v17 }
 0xee4   :  { %1551 = vrcp.f32 %v796_v18 }
 0xeee   :  { %v1552_v13 = vpop.eup %1551 }
 0xeef   :  { %v800_v0 = vmul.f32 %v1552_v13, %v708_v7 }
 0xf52   :  { %v803_v20 = vpop.permute.xlu0 %802 }
 0xf53   :  { %v805_v1 = vmul.f32 %v1552_v13, %v803_v20 }
 0xf55   :  { %807 = vrot.lane.b32.xlu1 %v805_v1, %s1627_s30 }
 0xfc7   :  { %v808_v19 = vpop.permute.xlu1 %807 }
 0xfc8   :  { %v1811_v21 = vadd.f32 %v808_v19, %v800_v0 }
 0xfca   :  { %1553 = vtanh.f32 %v1811_v21 }
 0xfd4   :  { %v1554_v24 = vpop.eup %1553 }
 0xfd5   :  { %813 = vrot.lane.b32.xlu0 %v1554_v24, %s1626_s3 }
0x1047   :  { %v814_v25 = vpop.permute.xlu0 %813 }
0x1048   :  { %v816_v26 = vmul.f32 %v1552_v13, %v814_v25 }
0x104a   :  { %818 = vrot.lane.b32.xlu1 %v816_v26, %s1627_s30 }
0x10bc   :  { %v819_v30 = vpop.permute.xlu1 %818 }
0x10bd   :  { %821 = vst.msk [vmem:[#allocation2 + $0x28] sm:$0xff] %vm208_vm2, %v819_v30  ;;  %1393 = vmatmul.mubr.msk.f32.vlgmr.msra.gmra.mrb[6].mxu1 %vm208_vm2, %v819_v30 }
0x10be   :  { %1493 = vmatpush3.bf16.msra.mxu1 %v1490_v23  ;;  %1414 = vmatprep.mubr.msk.f32.mxu1 %vm208_vm2, %v1026_v31 }
0x10bf   :  { %1495 = vmatprep.subr.bf16.mxu1 %v1494_v29 }
0x10c2   :  { %1497 = vmatpush3.bf16.msra.mxu1 %v1494_v29 }
0x10c4   :  { %v1031_v38 = vld [vmem:[#allocation2 + $0x28] sm:$0xff] }
0x10c5   :  { %1415 = vmatmul.mubr.msk.f32.vlgmr.msra.gmra.mrb[8].mxu1 %vm208_vm2, %v1027_v32 }
0x10c6   :  { %1417 = vmatprep.mubr.msk.f32.mxu1 %vm208_vm2, %v1028_v34 }
0x10c9   :  { %1418 = vmatmul.mubr.msk.f32.gmra.mrb[10].mxu1 %vm208_vm2, %v1029_v35 }
0x10ca   :  { %1420 = vmatprep.mubr.msk.f32.mxu1 %vm208_vm2, %v1030_v36 }
0x10cd   :  { %1421 = vmatmul.mubr.msk.f32.gmra.mrb[12].mxu1 %vm208_vm2, %v1031_v38 }
0x1190   :  { %v890_v40 = vpop.f32.mrb[6].mxu1 }
0x1191   :  { %v894_v42 = vadd.f32 %v890_v40, %v1745_v43  ;;  %v1394_v44 = vpop.f32.mrb[7].mxu1 }
0x1193   :  { %1555 = vtanh.f32 %v894_v42  ;;  %v1210_v57 = vmul.f32 -1.442695, %v894_v42 }
0x1195   :  { %1557 = vpow2.f32 %v1210_v57 }
0x1198   :  { %v1416_v46 = vpop.f32.mrb[8].mxu1 }
0x1199   :  { %v1141_v47 = vadd.f32 %v1416_v46, %v1840_v45  ;;  %v1135_v48 = vpop.f32.mrb[9].mxu1 }
0x119a   :  { %v1136_v49 = vadd.f32 %v1840_v45, %v1135_v48 }
0x119b   :  { %1176 = vst.msk [vmem:[%s1903_s6 + $0x8] sm:$0xff] %vm1174_vm3, %v1141_v47 }
0x119c   :  { %1175 = vst.msk [vmem:[%s1903_s6] sm:$0xff] %vm1174_vm3, %v1136_v49  ;;  %v1419_v43 = vpop.f32.mrb[10].mxu1 }
0x119d   :  { %v1556_v50 = vpop.eup %1555  ;;  %v1151_v51 = vadd.f32 %v1419_v43, %v1840_v45  ;;  %v1145_v52 = vpop.f32.mrb[11].mxu1 }
0x119e   :  { %v1146_v53 = vadd.f32 %v1840_v45, %v1145_v52  ;;  %904 = vrot.lane.b32.xlu0 %v1556_v50, %s1626_s3 }
0x119f   :  { %1178 = vst.msk [vmem:[%s1903_s6 + $0x18] sm:$0xff] %vm1174_vm3, %v1151_v51  ;;  %v1558_v58 = vpop.eup %1557 }
0x11a0   :  { %1177 = vst.msk [vmem:[%s1903_s6 + $0x10] sm:$0xff] %vm1174_vm3, %v1146_v53  ;;  %v1422_v33 = vpop.f32.mrb[12].mxu1  ;;  %v898_v59 = vadd.f32 1.0, %v1558_v58 }
0x11a1   :  { %v1161_v54 = vadd.f32 %v1422_v33, %v1840_v45  ;;  %v1155_v55 = vpop.f32.mrb[13].mxu1 }
0x11a2   :  { %v1156_v56 = vadd.f32 %v1840_v45, %v1155_v55  ;;  %1559 = vrcp.f32 %v898_v59 }
0x11a3   :  { %1180 = vst.msk [vmem:[%s1903_s6 + $0x28] sm:$0xff] %vm1174_vm3, %v1161_v54 }
0x11a4   :  { %1179 = vst.msk [vmem:[%s1903_s6 + $0x20] sm:$0xff] %vm1174_vm3, %v1156_v56 }
0x11ac   :  { %v1560_v60 = vpop.eup %1559 }
0x11ad   :  { %v902_v63 = vmul.f32 %v1560_v60, %v1811_v21 }
0x1210   :  { %v905_v61 = vpop.permute.xlu0 %904 }
0x1211   :  { %v907_v62 = vmul.f32 %v1560_v60, %v905_v61 }
0x1213   :  { %909 = vrot.lane.b32.xlu1 %v907_v62, %s1627_s30 }
0x1285   :  { %v910_v2 = vpop.permute.xlu1 %909 }
0x1286   :  { %v912_v3 = vadd.f32 %v910_v2, %v902_v63 }
0x1288   :  { %1561 = vtanh.f32 %v912_v3 }
0x1292   :  { %v1562_v4 = vpop.eup %1561 }
0x1293   :  { %915 = vrot.lane.b32.xlu0 %v1562_v4, %s1626_s3 }
0x1305   :  { %v916_v5 = vpop.permute.xlu0 %915 }
0x1306   :  { %v918_v6 = vmul.f32 %v1560_v60, %v916_v5 }
0x1308   :  { %920 = vrot.lane.b32.xlu1 %v918_v6, %s1627_s30 }
0x137a   :  { %v921_v7 = vpop.permute.xlu1 %920 }
0x137b   :  { %923 = vst.msk [vmem:[#allocation2 + $0x30] sm:$0xff] %vm208_vm2, %v921_v7  ;;  %1404 = vmatmul.mubr.msk.f32.vlgmr.msra.gmra.mrb[14].mxu0 %vm208_vm2, %v921_v7 }
0x1382   :  { %v1032_v39 = vld [vmem:[#allocation2 + $0x30] sm:$0xff] }
0x1383   :  { %1423 = vmatprep.mubr.msk.f32.mxu1 %vm208_vm2, %v1032_v39 }
0x144e   :  { %v992_v8 = vpop.f32.mrb[14].mxu0 }
0x144f   :  { %v996_v9 = vadd.f32 %v992_v8, %v1743_v41  ;;  %v1405_v10 = vpop.f32.mrb[15].mxu0 }
0x1451   :  { %1563 = vtanh.f32 %v996_v9  ;;  %v1212_v12 = vmul.f32 -1.442695, %v996_v9 }
0x1453   :  { %1565 = vpow2.f32 %v1212_v12 }
0x145b   :  { %v1564_v11 = vpop.eup %1563 }
0x145c   :  { %1006 = vrot.lane.b32.xlu0 %v1564_v11, %s1626_s3 }
0x145d   :  { %v1566_v14 = vpop.eup %1565 }
0x145e   :  { %v1000_v15 = vadd.f32 1.0, %v1566_v14 }
0x1460   :  { %1567 = vrcp.f32 %v1000_v15 }
0x146a   :  { %v1568_v16 = vpop.eup %1567 }
0x146b   :  { %v1004_v13 = vmul.f32 %v1568_v16, %v912_v3 }
0x14ce   :  { %v1007_v17 = vpop.permute.xlu0 %1006 }
0x14cf   :  { %v1009_v18 = vmul.f32 %v1568_v16, %v1007_v17 }
0x14d1   :  { %1011 = vrot.lane.b32.xlu1 %v1009_v18, %s1627_s30 }
0x1543   :  { %v1012_v20 = vpop.permute.xlu1 %1011 }
0x1544   :  { %v1014_v1 = vadd.f32 %v1012_v20, %v1004_v13 }
0x1546   :  { %1569 = vtanh.f32 %v1014_v1 }
0x1550   :  { %v1570_v41 = vpop.eup %1569 }
0x1551   :  { %1017 = vrot.lane.b32.xlu0 %v1570_v41, %s1626_s3 }
0x15c3   :  { %v1018_v0 = vpop.permute.xlu0 %1017 }
0x15c4   :  { %v1020_v19 = vmul.f32 %v1568_v16, %v1018_v0 }
0x15c6   :  { %1022 = vrot.lane.b32.xlu1 %v1020_v19, %s1627_s30 }
0x1638   :  { %v1023_v21 = vpop.permute.xlu1 %1022 }
0x1639   :  { %1025 = vst.msk [vmem:[#allocation2 + $0x38] sm:$0xff] %vm208_vm2, %v1023_v21 }
0x1640   :  { %v1033_v37 = vld [vmem:[#allocation2 + $0x38] sm:$0xff] }
0x1641   :  { %1424 = vmatmul.mubr.msk.f32.gmra.mrb[14].mxu1 %vm208_vm2, %v1033_v37 }
0x1714   :  { %v1425_v22 = vpop.f32.mrb[14].mxu1 }
0x1715   :  { %v1171_v23 = vadd.f32 %v1425_v22, %v1840_v45  ;;  %v1165_v24 = vpop.f32.mrb[15].mxu1 }
0x1716   :  { %v1166_v25 = vadd.f32 %v1840_v45, %v1165_v24 }
0x1717   :  { %1182 = vst.msk [vmem:[%s1903_s6 + $0x38] sm:$0xff] %vm1174_vm3, %v1171_v23 }
0x1718   :  { %1181 = vst.msk [vmem:[%s1903_s6 + $0x30] sm:$0xff] %vm1174_vm3, %v1166_v25 }
0x1719   :  { %1187 = vsyncpa [#allocation4], 1 }
0x171a   :  { %1188 = vsyncpa [#allocation6], 1 }

</bundles_post_ra>
